<compile_context>
chip_gen: v7x
topology: tpu7x:2x2x1
jax: 0.10.0
libtpu: 0.0.40
codegen_flags: <defaults>
</compile_context>

<pallas_src>
import jax
import jax.numpy as jnp
from jax.experimental import pallas as pl
from jax.experimental.pallas import tpu as pltpu


# ----------------------------------------------------------- VMEM budgets ---
def _vmem_capacity_bytes():
    try:
        return int(pltpu.get_tpu_info().vmem_capacity_bytes)
    except Exception:
        return 64 * 1024 * 1024          # conservative: v7x per-TensorCore VMEM


_VMEM_CAP = _vmem_capacity_bytes()
# Fused path keeps 2 in + 2 out double-buffered (1, C, HW) slabs resident plus
# elementwise temps -> cap the slab at ~1/8 of VMEM (8 MiB v7x, 16 MiB v5e/v6e).
_FUSED_SLAB_BUDGET = max(min(_VMEM_CAP // 8, 16 * 1024 * 1024), 2 * 1024 * 1024)
# Two-pass fallback uses (1, c_tile, hw_tile) blocks; ~1/16 of VMEM per block
# (4 MiB on v7x, 8 MiB on v5e/v6e) -- big enough to amortize per-step overhead.
_TILE_BUDGET = max(min(_VMEM_CAP // 16, 8 * 1024 * 1024), 1 * 1024 * 1024)
_VMEM_LIMIT = min(int(_VMEM_CAP * 0.75), 96 * 1024 * 1024)


def _sublane(itemsize):
    return max(8, 32 // itemsize)        # 8 for f32, 16 for bf16, 32 for int8


def _choose_tiles(C, HW, itemsize, budget):
    """Pick (c_tile, hw_tile) with block bytes ~<= budget and a TPU-legal
    layout: hw_tile is a multiple of 128 dividing HW (or the full HW extent),
    c_tile is a multiple of the sublane pack dividing C (or the full C)."""
    sub = _sublane(itemsize)
    if HW % 128 == 0:
        max_hw = max((budget // (itemsize * min(C, sub))) // 128 * 128, 128)
        hw_tile = min(max_hw, HW)
        while hw_tile > 128 and HW % hw_tile != 0:
            hw_tile -= 128
    else:
        hw_tile = HW            # full extent keeps the (8,128) rule satisfied
    if C % sub != 0:
        # Rare shape; full-C blocks are the only legal option without padding.
        c_tile = C
    else:
        max_c = max((budget // (itemsize * hw_tile)) // sub * sub, sub)
        c_tile = min(max_c, C)
        while c_tile > sub and C % c_tile != 0:
            c_tile -= sub
        if C % c_tile != 0:
            c_tile = sub
    return c_tile, hw_tile


# ------------------------------------------------------------ fused path ----
def _fused_se_kernel(x_ref, w1_ref, b1_ref, w2_ref, b2_ref, o_ref):
    # x_ref/o_ref: (1, C, HW); w1: (C_red, C); b1: (C_red, 1);
    # w2: (C, C_red); b2: (C, 1).  One read + one write of the slab.
    x = x_ref[...]
    inv_hw = jnp.float32(1.0 / x_ref.shape[-1])
    # squeeze: spatial mean per channel, f32 accumulation; channels stay on
    # the sublane axis throughout (no in-kernel relayouts).
    s = jnp.sum(x.astype(jnp.float32), axis=-1, keepdims=True)[0] * inv_hw  # (C,1)
    # excitation: fc1 + ReLU, fc2 + sigmoid (tiny MXU matmuls, f32).
    h = jnp.maximum(
        jnp.dot(w1_ref[...], s, preferred_element_type=jnp.float32)
        + b1_ref[...], 0.0)                                                  # (C_red,1)
    z = jnp.dot(w2_ref[...], h, preferred_element_type=jnp.float32) + b2_ref[...]
    g = 1.0 / (1.0 + jnp.exp(-z))                                            # (C,1)
    # re-scale in the native dtype (lane-dense stores).
    o_ref[...] = x * g.astype(x.dtype)[None, :, :]


def _fused_se(x_flat, w1, b1, w2, b2, vmem_limit):
    B, C, HW = x_flat.shape
    itemsize = jnp.dtype(x_flat.dtype).itemsize
    C_red = w1.shape[0]
    w1f = w1.astype(jnp.float32)                      # (C_red, C)
    w2f = w2.astype(jnp.float32)                      # (C, C_red)
    b1c = b1.astype(jnp.float32).reshape(C_red, 1)
    b2c = b2.astype(jnp.float32).reshape(C, 1)
    return pl.pallas_call(
        _fused_se_kernel,
        out_shape=jax.ShapeDtypeStruct((B, C, HW), x_flat.dtype),
        grid_spec=pltpu.PrefetchScalarGridSpec(
            num_scalar_prefetch=0,
            grid=(B,),
            in_specs=[
                pl.BlockSpec((1, C, HW), lambda b: (b, 0, 0)),
                pl.BlockSpec((C_red, C), lambda b: (0, 0)),
                pl.BlockSpec((C_red, 1), lambda b: (0, 0)),
                pl.BlockSpec((C, C_red), lambda b: (0, 0)),
                pl.BlockSpec((C, 1), lambda b: (0, 0)),
            ],
            out_specs=pl.BlockSpec((1, C, HW), lambda b: (b, 0, 0)),
        ),
        compiler_params=pltpu.CompilerParams(
            dimension_semantics=("parallel",),
            vmem_limit_bytes=vmem_limit,
        ),
        cost_estimate=pl.CostEstimate(
            flops=2 * B * C * HW + 4 * B * C * C_red,
            transcendentals=B * C,
            bytes_accessed=2 * B * C * HW * itemsize
            + (2 * C * C_red + C + C_red) * 4,
        ),
    )(x_flat, w1f, b1c, w2f, b2c)


# -------------------------------------------------- two-pass fallback path ---
def _squeeze_kernel(x_ref, sum_ref):
    # x_ref: (1, c_tile, hw_tile); sum_ref: (1, c_tile, 1) f32, resident over j.
    @pl.when(pl.program_id(2) == 0)
    def _():
        sum_ref[...] = jnp.zeros_like(sum_ref)

    sum_ref[...] += jnp.sum(x_ref[...].astype(jnp.float32), axis=-1,
                            keepdims=True)


def _squeeze_mean(x_flat, c_tile, hw_tile, vmem_limit):
    B, C, HW = x_flat.shape
    itemsize = jnp.dtype(x_flat.dtype).itemsize
    sums = pl.pallas_call(
        _squeeze_kernel,
        out_shape=jax.ShapeDtypeStruct((B, C, 1), jnp.float32),
        grid_spec=pltpu.PrefetchScalarGridSpec(
            num_scalar_prefetch=0,
            grid=(B, C // c_tile, HW // hw_tile),
            in_specs=[pl.BlockSpec((1, c_tile, hw_tile),
                                   lambda b, c, j: (b, c, j))],
            out_specs=pl.BlockSpec((1, c_tile, 1), lambda b, c, j: (b, c, 0)),
        ),
        compiler_params=pltpu.CompilerParams(
            dimension_semantics=("parallel", "parallel", "arbitrary"),
            vmem_limit_bytes=vmem_limit,
        ),
        cost_estimate=pl.CostEstimate(
            flops=B * C * HW,
            transcendentals=0,
            bytes_accessed=B * C * HW * itemsize + B * C * 4,
        ),
    )(x_flat)
    return sums.reshape(B, C) * (1.0 / HW)


def _scale_kernel(x_ref, s_ref, o_ref):
    # x_ref/o_ref: (1, c_tile, hw_tile); s_ref: (1, c_tile, 1) native dtype.
    o_ref[...] = x_ref[...] * s_ref[...]


def _apply_scale(x_flat, scale, c_tile, hw_tile, vmem_limit):
    B, C, HW = x_flat.shape
    itemsize = jnp.dtype(x_flat.dtype).itemsize
    scale3 = scale.astype(x_flat.dtype).reshape(B, C, 1)
    # TODO(synk): add input_output_aliases={0: 0} when the caller donates x.
    return pl.pallas_call(
        _scale_kernel,
        out_shape=jax.ShapeDtypeStruct((B, C, HW), x_flat.dtype),
        grid_spec=pltpu.PrefetchScalarGridSpec(
            num_scalar_prefetch=0,
            grid=(B, C // c_tile, HW // hw_tile),
            in_specs=[
                pl.BlockSpec((1, c_tile, hw_tile), lambda b, c, j: (b, c, j)),
                pl.BlockSpec((1, c_tile, 1), lambda b, c, j: (b, c, 0)),
            ],
            out_specs=pl.BlockSpec((1, c_tile, hw_tile),
                                   lambda b, c, j: (b, c, j)),
        ),
        compiler_params=pltpu.CompilerParams(
            dimension_semantics=("parallel", "parallel", "parallel"),
            vmem_limit_bytes=vmem_limit,
        ),
        cost_estimate=pl.CostEstimate(
            flops=B * C * HW,
            transcendentals=0,
            bytes_accessed=2 * B * C * HW * itemsize + B * C * itemsize,
        ),
    )(x_flat, scale3)


def _channel_se_two_pass(x_flat, w1, b1, w2, b2, tile_budget=None,
                         vmem_limit=None):
    B, C, HW = x_flat.shape
    itemsize = jnp.dtype(x_flat.dtype).itemsize
    budget = _TILE_BUDGET if tile_budget is None else tile_budget
    limit = _VMEM_LIMIT if vmem_limit is None else vmem_limit
    c_tile, hw_tile = _choose_tiles(C, HW, itemsize, budget)

    # (1) squeeze: tiled Pallas reduction, f32 accumulation.
    s = _squeeze_mean(x_flat, c_tile, hw_tile, limit)                  # (B, C)
    # (2) excitation: tiny batched MLP, hoisted to XLA (off the hot loop).
    h = jax.nn.relu(jnp.dot(s, w1.astype(jnp.float32).T,
                            preferred_element_type=jnp.float32)
                    + b1.astype(jnp.float32))
    g = jax.nn.sigmoid(jnp.dot(h, w2.astype(jnp.float32).T,
                               preferred_element_type=jnp.float32)
                       + b2.astype(jnp.float32))
    # (3) re-scale: HBM-roofline tiled broadcast multiply.
    return _apply_scale(x_flat, g, c_tile, hw_tile, limit)


# ----------------------------------------------------------------- wrapper --
def channel_se_layer(x, w1, b1, w2, b2):
    """Forward of ChannelSELayer. x: (B, C, H, W) (or list/tuple concatenated
    on channels). w1: (C//r, C), b1: (C//r,), w2: (C, C//r), b2: (C,)."""
    if isinstance(x, (list, tuple)):
        x = jnp.concatenate(x, axis=1)
    B, C, H, W = x.shape
    HW = H * W
    itemsize = jnp.dtype(x.dtype).itemsize
    x_flat = x.reshape(B, C, HW)

    if C * HW * itemsize <= _FUSED_SLAB_BUDGET:
        out_flat = _fused_se(x_flat, w1, b1, w2, b2, _VMEM_LIMIT)
    else:
        out_flat = _channel_se_two_pass(x_flat, w1, b1, w2, b2)
    return out_flat.reshape(B, C, H, W)


# --------------------------------------------------------------- reference --
def _reference(x, w1, b1, w2, b2):
    B, C, H, W = x.shape
    s = x.reshape(B, C, -1).astype(jnp.float32).mean(axis=2)
    h = jax.nn.relu(s @ w1.T + b1)
    z = jax.nn.sigmoid(h @ w2.T + b2)
    return x * z[:, :, None, None].astype(x.dtype)


if __name__ == "__main__":
    def make_params(keys, C, C_red):
        k1, k2, k3, k4 = keys
        bound1 = 1.0 / (C ** 0.5)
        w1 = jax.random.uniform(k1, (C_red, C), jnp.float32, -bound1, bound1)
        b1 = jax.random.uniform(k2, (C_red,), jnp.float32, -bound1, bound1)
        bound2 = 1.0 / (C_red ** 0.5)
        w2 = jax.random.uniform(k3, (C, C_red), jnp.float32, -bound2, bound2)
        b2 = jax.random.uniform(k4, (C,), jnp.float32, -bound2, bound2)
        return w1, b1, w2, b2

    # --- primary fused path (small smoke-test shape) -------------------------
    B, C, H, W = 2, 4, 16, 16
    C_red = C // 4
    kx, *kp = jax.random.split(jax.random.PRNGKey(0), 5)
    x = jax.random.normal(kx, (B, C, H, W), dtype=jnp.float32)
    w1, b1, w2, b2 = make_params(kp, C, C_red)
    out = jax.block_until_ready(channel_se_layer(x, w1, b1, w2, b2))
    ref = _reference(x, w1, b1, w2, b2)
    assert out.shape == (B, C, H, W)
    assert jnp.allclose(out, ref, atol=1e-5, rtol=1e-5), "fused path mismatch"

    # --- tiled two-pass fallback, 128-aligned HW, forced small tile budget ---
    B2, C2, H2, W2 = 2, 16, 16, 16
    kx2, *kp2 = jax.random.split(jax.random.PRNGKey(1), 5)
    x2 = jax.random.normal(kx2, (B2, C2, H2, W2), dtype=jnp.float32)
    p2 = make_params(kp2, C2, C2 // 4)
    out2 = jax.block_until_ready(
        _channel_se_two_pass(x2.reshape(B2, C2, -1), *p2, tile_budget=4096)
    ).reshape(B2, C2, H2, W2)
    assert jnp.allclose(out2, _reference(x2, *p2), atol=1e-5, rtol=1e-5), \
        "two-pass (HW-tiled) mismatch"

    # --- tiled two-pass fallback, non-128-multiple spatial size (HW=49) ------
    B3, C3, H3, W3 = 2, 8, 7, 7
    kx3, *kp3 = jax.random.split(jax.random.PRNGKey(2), 5)
    x3 = jax.random.normal(kx3, (B3, C3, H3, W3), dtype=jnp.float32)
    p3 = make_params(kp3, C3, C3 // 4)
    out3 = jax.block_until_ready(
        _channel_se_two_pass(x3.reshape(B3, C3, -1), *p3, tile_budget=4096)
    ).reshape(B3, C3, H3, W3)
    assert jnp.allclose(out3, _reference(x3, *p3), atol=1e-5, rtol=1e-5), \
        "two-pass (C-tiled, unaligned HW) mismatch"

    print("KERNEL_OK")
</pallas_src>

<mosaic_0001>
module attributes {stable_mosaic.version = 11 : i64} {
  func.func @_fused_se_kernel(%arg0: i32, %arg1: memref<1x4x256xf32, #tpu.memory_space<vmem>>, %arg2: memref<1x4xf32, #tpu.memory_space<vmem>>, %arg3: memref<1x1xf32, #tpu.memory_space<vmem>>, %arg4: memref<4x1xf32, #tpu.memory_space<vmem>>, %arg5: memref<4x1xf32, #tpu.memory_space<vmem>>, %arg6: memref<1x4x256xf32, #tpu.memory_space<vmem>>) attributes {dimension_semantics = [#tpu.dimension_semantics<parallel>], iteration_bounds = array<i64: 2>, scalar_prefetch = 0 : i64, scratch_operands = 0 : i64, tpu.core_type = #tpu.core_type<tc>, window_params = [{transform_indices = @transform_0, window_bounds = array<i64: 1, 4, 256>}, {pipeline_mode = #tpu.pipeline_mode<synchronous>, transform_indices = @transform_1, window_bounds = array<i64: 1, 4>}, {pipeline_mode = #tpu.pipeline_mode<synchronous>, transform_indices = @transform_2, window_bounds = array<i64: 1, 1>}, {pipeline_mode = #tpu.pipeline_mode<synchronous>, transform_indices = @transform_3, window_bounds = array<i64: 4, 1>}, {pipeline_mode = #tpu.pipeline_mode<synchronous>, transform_indices = @transform_4, window_bounds = array<i64: 4, 1>}, {transform_indices = @transform_5, window_bounds = array<i64: 1, 4, 256>}]} {
    %c0 = arith.constant 0 : index
    %c0_0 = arith.constant 0 : index
    %c0_1 = arith.constant 0 : index
    %0 = vector.load %arg1[%c0, %c0_0, %c0_1] : memref<1x4x256xf32, #tpu.memory_space<vmem>>, vector<1x4x256xf32>
    %cst = arith.constant dense<0.000000e+00> : vector<1x4xf32>
    %1 = vector.multi_reduction <add>, %0, %cst [2] : vector<1x4x256xf32> to vector<1x4xf32>
    %2 = vector.shape_cast %1 : vector<1x4xf32> to vector<1x4x1xf32>
    %3 = vector.shape_cast %2 : vector<1x4x1xf32> to vector<4x1xf32>
    %cst_2 = arith.constant 3.906250e-03 : f32
    %4 = vector.broadcast %cst_2 : f32 to vector<4x1xf32>
    %5 = arith.mulf %3, %4 : vector<4x1xf32>
    %c0_3 = arith.constant 0 : index
    %c0_4 = arith.constant 0 : index
    %6 = vector.load %arg2[%c0_3, %c0_4] : memref<1x4xf32, #tpu.memory_space<vmem>>, vector<1x4xf32>
    %cst_5 = arith.constant dense<0.000000e+00> : vector<1x1xf32>
    %7 = tpu.matmul %6, %5, %cst_5 {dimension_numbers = #tpu.dot_dimension_numbers<[1], [0], [0], [1], [0, 0, 1, 1], [], []>} : vector<1x4xf32>, vector<4x1xf32>, vector<1x1xf32> -> vector<1x1xf32>
    %c0_6 = arith.constant 0 : index
    %c0_7 = arith.constant 0 : index
    %8 = vector.load %arg3[%c0_6, %c0_7] : memref<1x1xf32, #tpu.memory_space<vmem>>, vector<1x1xf32>
    %9 = arith.addf %7, %8 : vector<1x1xf32>
    %cst_8 = arith.constant 0.000000e+00 : f32
    %10 = vector.broadcast %cst_8 : f32 to vector<1x1xf32>
    %11 = arith.maximumf %9, %10 : vector<1x1xf32>
    %c0_9 = arith.constant 0 : index
    %c0_10 = arith.constant 0 : index
    %12 = vector.load %arg4[%c0_9, %c0_10] : memref<4x1xf32, #tpu.memory_space<vmem>>, vector<4x1xf32>
    %cst_11 = arith.constant dense<0.000000e+00> : vector<4x1xf32>
    %13 = tpu.matmul %12, %11, %cst_11 {dimension_numbers = #tpu.dot_dimension_numbers<[1], [0], [0], [1], [0, 0, 1, 1], [], []>} : vector<4x1xf32>, vector<1x1xf32>, vector<4x1xf32> -> vector<4x1xf32>
    %c0_12 = arith.constant 0 : index
    %c0_13 = arith.constant 0 : index
    %14 = vector.load %arg5[%c0_12, %c0_13] : memref<4x1xf32, #tpu.memory_space<vmem>>, vector<4x1xf32>
    %15 = arith.addf %13, %14 : vector<4x1xf32>
    %cst_14 = arith.constant 0.000000e+00 : f32
    %16 = vector.broadcast %cst_14 : f32 to vector<4x1xf32>
    %17 = arith.subf %16, %15 : vector<4x1xf32>
    %18 = math.exp %17 : vector<4x1xf32>
    %cst_15 = arith.constant 1.000000e+00 : f32
    %19 = vector.broadcast %cst_15 : f32 to vector<4x1xf32>
    %20 = arith.addf %19, %18 : vector<4x1xf32>
    %cst_16 = arith.constant 1.000000e+00 : f32
    %21 = vector.broadcast %cst_16 : f32 to vector<4x1xf32>
    %22 = arith.divf %21, %20 : vector<4x1xf32>
    %23 = vector.shape_cast %22 : vector<4x1xf32> to vector<1x4x1xf32>
    %24 = vector.broadcast %23 : vector<1x4x1xf32> to vector<1x4x256xf32>
    %25 = arith.mulf %0, %24 : vector<1x4x256xf32>
    %c0_17 = arith.constant 0 : index
    %c0_18 = arith.constant 0 : index
    %c0_19 = arith.constant 0 : index
    %26 = vector.load %arg6[%c0_17, %c0_18, %c0_19] : memref<1x4x256xf32, #tpu.memory_space<vmem>>, vector<1x4x256xf32>
    tpu.vector_store %arg6[%c0_17, %c0_18, %c0_19], %25 {strides = array<i32>} : memref<1x4x256xf32, #tpu.memory_space<vmem>>, vector<1x4x256xf32>,
    return
  }
  func.func @transform_0(%arg0: i32) -> (i32, i32, i32) {
    %c0_i32 = arith.constant 0 : i32
    %c0_i32_0 = arith.constant 0 : i32
    %c0_i32_1 = arith.constant 0 : i32
    return %arg0, %c0_i32, %c0_i32_0 : i32, i32, i32
  }
  func.func @transform_1(%arg0: i32) -> (i32, i32) {
    %c0_i32 = arith.constant 0 : i32
    %c0_i32_0 = arith.constant 0 : i32
    %c0_i32_1 = arith.constant 0 : i32
    return %c0_i32, %c0_i32_0 : i32, i32
  }
  func.func @transform_2(%arg0: i32) -> (i32, i32) {
    %c0_i32 = arith.constant 0 : i32
    %c0_i32_0 = arith.constant 0 : i32
    %c0_i32_1 = arith.constant 0 : i32
    return %c0_i32, %c0_i32_0 : i32, i32
  }
  func.func @transform_3(%arg0: i32) -> (i32, i32) {
    %c0_i32 = arith.constant 0 : i32
    %c0_i32_0 = arith.constant 0 : i32
    %c0_i32_1 = arith.constant 0 : i32
    return %c0_i32, %c0_i32_0 : i32, i32
  }
  func.func @transform_4(%arg0: i32) -> (i32, i32) {
    %c0_i32 = arith.constant 0 : i32
    %c0_i32_0 = arith.constant 0 : i32
    %c0_i32_1 = arith.constant 0 : i32
    return %c0_i32, %c0_i32_0 : i32, i32
  }
  func.func @transform_5(%arg0: i32) -> (i32, i32, i32) {
    %c0_i32 = arith.constant 0 : i32
    %c0_i32_0 = arith.constant 0 : i32
    %c0_i32_1 = arith.constant 0 : i32
    return %arg0, %c0_i32, %c0_i32_0 : i32, i32, i32
  }
}

</mosaic_0001>

<bundles_post_ra>
// kernel: tpu_custom_call.1
= control target key start
LH: loop header
LB: loop body
LE: loop exit
PB: predicated region body
PF: predicated region fallthrough
CT: control target
= control target key end

     0   :  { %s923_s0 = inlined_call_operand.hbm [shape: f32[2,4,256], index: 0, kind: input, shape index: {}]   ;;  %s924_s1 = inlined_call_operand.vmem [shape: f32[1,4], index: 1, kind: input, shape index: {}]   ;;  %s925_s2 = inlined_call_operand.<no memory space> [shape: f32[1,1], index: 2, kind: input, shape index: {}]   ;;  %s926_s3 = inlined_call_operand.vmem [shape: f32[4,1], index: 3, kind: input, shape index: {}]   ;;  %s927_s4 = inlined_call_operand.vmem [shape: f32[4,1], index: 4, kind: input, shape index: {}]   ;;  %s928_s5 = inlined_call_operand.hbm [shape: f32[2,4,256], index: 5, kind: output, shape index: {}]  }
   0x1   :  { %v10_v0 = vstv %s925_s2 }
   0x2   :  { %11 = vst [vmem:[#allocation2] sm:$0x1] %v10_v0 }
   0x3   :  { %12 = vsyncpa [#allocation4], 0 }
   0x4   :  { %14 = vsyncpa [#allocation4 + $0x1], 0 }
   0x5   :  { %15 = vsyncpa [#allocation5], 0 }
   0x6   :  { %17 = vsyncpa [#allocation5 + $0x1], 0  ;;  %s746_s20 = smov 0   ;;  %s748_s21 = smov 0  }
   0x7   :  { %s750_s22 = smov 0   ;;  %s752_s23 = smov 0  }
   0x8 LB: > { %s767_s2 = sadd.s32 4294967295, %s705_s23   ;;  %s519_s24 = sadd.s32 4294967294, %s705_s23   ;;  %s705_s23 = sphi %s752_s23, %s943_s23   ;;  %s701_s22 = sphi %s750_s22, %s942_s22   ;;  %s697_s21 = sphi %s748_s21, %s941_s21   ;;  %s693_s20 = sphi %s746_s20, %s940_s20  }
   0x9   : > { %s771_s25 = sadd.s32 1, %s705_s23   ;;  %s30_s26 = sadd.s32 1, %s701_s22 }
   0xa   : > { %s27_s27 = ssub.s32 %s705_s23, %s771_s25  ;;  %p37_p0 = scmp.ne.s32.totalorder %s701_s22, %s697_s21 }
   0xb   : > { %p28_p1 = scmp.eq.s32.totalorder %s27_s27, 0  ;;  %p38_p2 = scmp.eq.s32.totalorder %s705_s23, 0 }
   0xc   : > { %p43_p3 = scmp.ne.s32.totalorder %s697_s21, %s693_s20  ;;  %p44_p4 = scmp.eq.s32.totalorder %s767_s2, 0 }
   0xd   : > { %s783_s28 = scalar_select %p28_p1, %s701_s22, %s30_s26  }
   0xe   : > { %p785_p5 = por %p38_p2, %p37_p0  ;;  %p789_p6 = por %p44_p4, %p43_p3 }
   0xf   : > { %p151_p7 = scmp.eq.s32.totalorder %s767_s2, 1  ;;  %p157_p8 = scmp.eq.s32.totalorder %s519_s24, 1 }
  0x10   : > { %p565_p10 = scmp.lt.s32.totalorder %s705_s23, 2  ;;  %s189_s8 = sand.u32 1, %s701_s22  }
  0x11   : > { %p796_p11 = por %p151_p7, %p37_p0  ;;  %p800_p12 = por %p157_p8, %p43_p3 }
  0x12   : > { %s537_s9 = sshll.u32 %s705_s23, 7  ;;  %s522_s10 = sshll.u32 %s189_s8, 3 }
  0x13   : > { %s932_s6 = scalar_select %p796_p11, 1, 0 }
  0x14   : > { %s933_s7 = scalar_select %p800_p12, 1, 0 }
  0x15   : > { %s809_s13 = scalar_lea.hbm %s923_s0, %s537_s9  ;;  %s193_s14 = scalar_lea.vmem [#allocation3], %s522_s10 }
  0x16   : > { %s201_s15 = sshll.u32 %s193_s14, 4  ;;  %p813_p13 = pnand %p565_p10, %p785_p5  ;;  %s817_s15 = int_to_ptr.vmem [resolvable:$true] %s201_s15 }
  0x17   : > { %s190_s17 = scalar_lea.sflag [#allocation4], %s189_s8  ;;  %s609_s18 = scalar_lea.hbm %s809_s13, 128 }
  0x18   : > { %p610_p2 = scmp.ne.s32.totalorder %s809_s13, %s609_s18  ;;  %p611_p3 = pneg %p813_p13 }
  0x19   : > { %s614_s26 = scalar_lea.hbm %s923_s0, 256  ;;  %p615_p5 = scmp.lt.u32.totalorder %s809_s13, %s923_s0 }
  0x1a   : > { %p612_p4 = pnand %p611_p3, %p610_p2  ;;  %p616_p8 = scmp.lt.u32.totalorder %s614_s26, %s609_s18 }
  0x1b   : > { %p618_p9 = scmp.lt.u32.totalorder %s609_s18, %s809_s13 }
  0x1c   : > { %p613_p7 = pneg %p612_p4  ;;  %p617_p10 = por %p616_p8, %p615_p5 }
  0x1e   : > { %p619_p0 = por %p618_p9, %p617_p10 }
  0x20   : > { %p620_p1 = pnand %p619_p0, %p613_p7 }
  0x22   : > { %623 = shalt.err (!%p620_p1)
}
  0x23   : > { %s624_s8 = scalar_lea.vmem %s817_s15, 128  ;;  %s707_s9 = smov [#allocation3]  }
  0x24   : > { %p625_p2 = scmp.ne.s32.totalorder %s817_s15, %s624_s8  ;;  %s629_s10 = sshll.u32 %s707_s9, 4  ;;  %s630_s10 = int_to_ptr.vmem [resolvable:$false] %s629_s10 }
  0x25   : > { %s631_s11 = scalar_lea.vmem %s630_s10, 256  ;;  %p632_p11 = scmp.lt.s32.totalorder %s817_s15, %s630_s10 }
  0x26   : > { %p627_p4 = pnand %p625_p2, %p611_p3  ;;  %p633_p5 = scmp.lt.s32.totalorder %s631_s11, %s624_s8 }
  0x28   : > { %p628_p12 = pneg %p627_p4  ;;  %p634_p8 = por %p633_p5, %p632_p11 }
  0x2a   : > { %p635_p9 = pnand %p634_p8, %p628_p12 }
  0x2c   : > { %638 = shalt.err (!%p635_p9)
}
  0x2d   : > { %560 = dma.hbm_to_vmem [thread:$0]  (!%p813_p13), %s809_s13, 128, %s817_s15, %s190_s17  }
  0x2e   : > { %p935_p0 = scmp.lt.s32.totalorder %s705_s23, 3  ;;  %p936_p1 = scmp.ge.s32.totalorder %s705_s23, 1 }
  0x30   : > { %p207_p3 = pnand %p936_p1, %p935_p0 }
  0x31   : > { %s851_s12 = sand.u32 (!%p207_p3), 1, %s697_s21  }
  0x32   : > { %210 = sbr.rel (%p207_p3) target bundleno = 814 (0x32e), region = 40  ;;  %s526_s14 = sshll.u32 (!%p207_p3), %s851_s12, 3 }
  0x33   : > { %s213_s18 = scalar_lea.sflag (!%p207_p3), [#allocation4], %s851_s12  ;;  %s216_s16 = scalar_lea.vmem (!%p207_p3), [#allocation3], %s526_s14 }
  0x39   : > { %684 = dma.done.wait (%p789_p6), %s213_s18, 128  }
  0x3a   : > { %686 = vsyncadd (%p789_p6), %s213_s18, 4294967168  ;;  %vm247_vm0 = vcmask 1043456   ;;  %v243_v1 = vld [vmem:[%s216_s16] sm:$0xff]  ;;  %v708_v6 = vmov 0.0   ;;  %vm709_vm1 = vmmov 0   ;;  %vm256_vm2 = vcmask 31744  }
  0x3b   : > { %v245_v2 = vcombine.high %v243_v1, %v243_v1  ;;  %v248_v3 = vsel %vm247_vm0, %v243_v1, 0.0  ;;  %543 = vmatprep.subr.mxu0 %v708_v6  ;;  %548 = vmatprep.subr.mxu1 %v708_v6  ;;  %v254_v9 = vld [vmem:[%s924_s1] sm:$0x1]  ;;  %vm340_vm3 = vcmask 1040384   ;;  %vm336_vm4 = vcmask 7168   ;;  %s538_s26 = sshll.u32 %s767_s2, 7 }
  0x3c   : > { %545 = vmatprep.mubr.msk.f32.mxu0 %vm709_vm1, %v708_v6  ;;  %550 = vmatprep.mubr.msk.f32.mxu1 %vm709_vm1, %v708_v6  ;;  %v255_v10 = vld [vmem:[#allocation2] sm:$0x1]  ;;  %v710_v16 = vmov 0   ;;  %v711_v26 = vmov 839922192   ;;  %v427_v28 = vlaneseq  ;;  %s242_s27 = scalar_lea.vmem [#allocation6], %s526_s14  ;;  %s879_s10 = scalar_lea.hbm %s928_s5, %s538_s26 }
  0x3d   : > { %v249_v4 = vsel %vm247_vm0, %v245_v2, 0.0  ;;  %v334_v15 = vld [vmem:[%s926_s3] sm:$0xf]  ;;  %603 = vset.pattern.permute.xlu0 %v710_v16  ;;  %v425_v27 = vunpack.c.l.s4 %v711_v26  ;;  %s449_s29 = sshll.u32 %s242_s27, 4  ;;  %s435_s11 = scalar_lea.sflag [#allocation5], %s851_s12  ;;  %s881_s29 = int_to_ptr.vmem [resolvable:$true] %s449_s29 }
  0x3e   : > { %v250_v5 = vadd.f32 %v249_v4, %v248_v3  ;;  %v335_v17 = vld [vmem:[%s927_s4] sm:$0xf]  ;;  %v428_v30 = vshrl.u32 %v427_v28, 7  ;;  %s639_s18 = scalar_lea.vmem %s881_s29, 128  ;;  %p937_p11 = scmp.ne.s32.totalorder %s932_s6, 0 }
  0x3f   : > { %v426_v29 = vunpack.c.0.s8 %v425_v27  ;;  %p640_p6 = scmp.ne.s32.totalorder %s881_s29, %s639_s18  ;;  %s712_s2 = smov [#allocation6]  }
  0x40   : > { %251 = vadd.xlane.f32.xlu0 %v250_v5  ;;  %s643_s14 = sshll.u32 %s712_s2, 4  ;;  %s644_s14 = int_to_ptr.vmem [resolvable:$false] %s643_s14 }
  0x41   : > { %v429_v31 = vsub.s32 %v426_v29, %v428_v30  ;;  %p641_p12 = pnand %p640_p6, %p937_p11  ;;  %s645_s16 = scalar_lea.vmem %s644_s14, 256 }
  0x42   : > { %p646_p7 = scmp.lt.s32.totalorder %s881_s29, %s644_s14  ;;  %p647_p10 = scmp.lt.s32.totalorder %s645_s16, %s639_s18 }
  0x43   : > { %p642_p13 = pneg %p641_p12 }
  0x44   : > { %p648_p2 = por %p647_p10, %p646_p7 }
  0x46   : > { %p649_p4 = pnand %p648_p2, %p642_p13 }
  0xcd   : > { %v252_v7 = vpop.xlane.xlu0 %251 }
  0xce   : > { %v253_v8 = vmul.f32 0.00390625, %v252_v7 }
  0xd0   : > { %544 = vmatpush3.msk.msra.mxu0 %vm247_vm0, %v253_v8 }
  0xd1   : > { %546 = vmatmul.mubr.msk.f32.vlgmr.msra.gmra.mrb[0].mxu0 %vm256_vm2, %v254_v9 }
 0x1a4   : > { %v329_v11 = vpop.f32.mrb[0].mxu0 }
 0x1a5   : > { %v330_v12 = vadd.f32 %v329_v11, %v255_v10  ;;  %v547_v13 = vpop.f32.mrb[1].mxu0 }
 0x1a7   : > { %v333_v14 = vmax.f32 %v330_v12, 0.0 }
 0x1a9   : > { %549 = vmatpush3.msk.msra.mxu1 %vm340_vm3, %v333_v14 }
 0x1aa   : > { %551 = vmatmul.mubr.msk.f32.vlgmr.msra.gmra.mrb[0].mxu1 %vm336_vm4, %v334_v15 }
 0x27d   : > { %v410_v18 = vpop.f32.mrb[0].mxu1 }
 0x27e   : > { %v411_v19 = vadd.f32 %v410_v18, %v335_v17  ;;  %v552_v20 = vpop.f32.mrb[1].mxu1 }
 0x280   : > { %v414_v21 = vsub.f32 0.0, %v411_v19 }
 0x282   : > { %v415_v22 = vmul.f32 1.442695, %v414_v21 }
 0x284   : > { %605 = vpow2.f32 %v415_v22 }
 0x28e   : > { %v606_v23 = vpop.eup %605 }
 0x28f   : > { %v417_v24 = vadd.f32 1.0, %v606_v23 }
 0x291   : > { %607 = vrcp.f32 %v417_v24 }
 0x29b   : > { %v608_v25 = vpop.eup %607 }
 0x29c   : > { %422 = vperm.xlu0 %603, %v608_v25  }
 0x31b   : > { %v423_v32 = vpop.permute.xlu0 %422 }
 0x31c   : > { %v430_v33 = vrot.slane %v423_v32, %v429_v31 }
 0x31e   : > { %v432_v34 = vmul.f32 %v430_v33, %v243_v1 }
 0x320   : > { %433 = vst [vmem:[%s242_s27] sm:$0xff] %v432_v34 }
 0x321   : > { %652 = shalt.err (!%p649_p4)
}
 0x322   : > { %s653_s12 = scalar_lea.hbm %s879_s10, 128  ;;  %s657_s15 = scalar_lea.hbm %s928_s5, 256 }
 0x323   : > { %p654_p5 = scmp.ne.s32.totalorder %s879_s10, %s653_s12  ;;  %p658_p0 = scmp.lt.u32.totalorder %s879_s10, %s928_s5 }
 0x324   : > { %p659_p1 = scmp.lt.u32.totalorder %s657_s15, %s653_s12  ;;  %p661_p6 = scmp.lt.u32.totalorder %s653_s12, %s879_s10 }
 0x325   : > { %p655_p8 = pnand %p654_p5, %p937_p11 }
 0x326   : > { %p660_p3 = por %p659_p1, %p658_p0 }
 0x327   : > { %p656_p9 = pneg %p655_p8 }
 0x328   : > { %p662_p12 = por %p661_p6, %p660_p3 }
 0x32a   : > { %p663_p13 = pnand %p662_p12, %p656_p9 }
 0x32c   : > { %666 = shalt.err (!%p663_p13)
}
 0x32d   : > { %555 = dma.vmem_to_hbm [thread:$0]  (%p937_p11), %s881_s29, 128, %s879_s10, %s435_s11  }
 0x32e PF: > { %s461_s24 = sand.u32 1, %s693_s20   ;;  %p938_p7 = scmp.ne.s32.totalorder %s933_s7, 0 }
 0x32f   : > { %p939_p10 = scmp.ge.s32.totalorder %s705_s23, 2  ;;  %s462_s26 = scalar_lea.sflag [#allocation5], %s461_s24 }
 0x331   : > { %p562_p2 = pnand %p939_p10, %p938_p7 }
 0x333   : > { %688 = dma.done.wait (!%p562_p2), %s462_s26, 128  }
 0x334   : > { %690 = vsyncadd (!%p562_p2), %s462_s26, 4294967168  ;;  %p20_p4 = scmp.ge.s32.totalorder %s771_s25, 4   ;;  %s940_s20 = smov %s697_s21 }
 0x335   : > { %s941_s21 = smov %s701_s22  ;;  %s942_s22 = smov %s783_s28 }
 0x336   : > { %s943_s23 = smov %s771_s25  ;;  %22 = sbr.rel (!%p20_p4) target bundleno = 8 (0x8), region = 85 }
 0x33d   :  { %467 = vsyncpa [#allocation4], 1 }
 0x33e   :  { %469 = vsyncpa [#allocation4 + $0x1], 1 }
 0x33f   :  { %470 = vsyncpa [#allocation5], 1 }
 0x340   :  { %472 = vsyncpa [#allocation5 + $0x1], 1 }

</bundles_post_ra>
